<compile_context>
chip_gen: v6e
topology: v6e:2x2x1
jax: 0.10.0
libtpu: 0.0.40
codegen_flags: <defaults>
</compile_context>

<pallas_src>
import functools

import jax
import jax.numpy as jnp
from jax.experimental import pallas as pl
from jax.experimental.pallas import tpu as pltpu


# ---------------------------------------------------------------------------
# Kernel: one fused conv(+BN bias) [+ residual | + fused 1x1 shortcut] [+ReLU]
# ---------------------------------------------------------------------------
def _block_kernel(*refs, relu, res_mode):
    """Single-dot conv + bias, optional residual add (identity or fused 1x1
    shortcut conv), optional ReLU. All epilogue math in f32."""
    if res_mode == "none":
        xs_ref, w_ref, b_ref, o_ref = refs
    elif res_mode == "identity":
        xs_ref, w_ref, b_ref, r_ref, o_ref = refs
    else:  # "conv": fused 1x1 downsample shortcut
        xs_ref, w_ref, b_ref, xss_ref, ws_ref, bs_ref, o_ref = refs

    # (tHW, K*Cin) @ (K*Cin, tCout) on the MXU, f32 accumulation.
    acc = jnp.dot(xs_ref[0], w_ref[...], preferred_element_type=jnp.float32)
    out = acc + b_ref[...]                       # folded BN bias

    if res_mode == "identity":
        out = out + r_ref[0].astype(jnp.float32)
    elif res_mode == "conv":
        sc = jnp.dot(xss_ref[0], ws_ref[...], preferred_element_type=jnp.float32)
        out = out + sc + bs_ref[...]

    if relu:
        out = jnp.maximum(out, 0.0)
    o_ref[0] = out.astype(o_ref.dtype)


# ---------------------------------------------------------------------------
# Wrapper-side glue
# ---------------------------------------------------------------------------
def _pick_tile(total, max_tile, mult):
    """Largest divisor of `total` that is a multiple of `mult` and <= max_tile,
    else the full dimension."""
    if total <= max_tile:
        return total
    t = (max_tile // mult) * mult
    while t >= mult:
        if total % t == 0:
            return t
        t -= mult
    return total


def _im2col(x_nhwc, kh, kw, stride, pad):
    """Pack the K=kh*kw shifted/strided taps along channels: (N, Ho*Wo, K*Cin)."""
    n, h, w, c = x_nhwc.shape
    ho = (h + 2 * pad - kh) // stride + 1
    wo = (w + 2 * pad - kw) // stride + 1
    xp = jnp.pad(x_nhwc, ((0, 0), (pad, pad), (pad, pad), (0, 0)))
    cols = []
    for ih in range(kh):
        for iw in range(kw):
            v = xp[:, ih:ih + (ho - 1) * stride + 1:stride,
                      iw:iw + (wo - 1) * stride + 1:stride, :]
            cols.append(v.reshape(n, ho * wo, c))
    return jnp.concatenate(cols, axis=-1), ho, wo


def _bn_fold(gamma, beta, mean, var, eps=1e-5):
    s = gamma / jnp.sqrt(var + eps)
    return s, beta - mean * s


def _fold_weight(w_oihw, scale):
    """OIHW conv weight -> (KH*KW*Cin, Cout) matmul weight with BN scale folded
    in, cast to bf16 for the MXU."""
    cout, cin, kh, kw = w_oihw.shape
    wm = jnp.transpose(w_oihw, (2, 3, 1, 0)).reshape(kh * kw * cin, cout)
    return (wm * scale[None, :]).astype(jnp.bfloat16)


def conv_block_pallas(xs, w, bias, *, relu, residual=None, shortcut=None,
                      out_dtype=jnp.float32, max_hw_tile=512, max_cout_tile=256):
    """Fused conv(+BN) [+residual | +fused 1x1 shortcut conv(+BN)] [+ReLU].

    xs   : (N, HW, K*Cin)  bf16  packed activation taps
    w    : (K*Cin, Cout)   bf16  BN-scale-folded weights
    bias : (1, Cout)       f32   folded BN bias
    residual : (N, HW, Cout) bf16   identity shortcut        (optional)
    shortcut : (xss, ws, bs)        fused 1x1 conv shortcut  (optional)
    """
    n, hw, kcin = xs.shape
    cout = w.shape[1]
    thw = _pick_tile(hw, max_hw_tile, 8)      # sublane-aligned spatial tile
    tco = _pick_tile(cout, max_cout_tile, 128)  # lane-aligned Cout tile
    grid = (n, hw // thw, cout // tco)

    in_specs = [
        pl.BlockSpec((1, thw, kcin), lambda b, i, j: (b, i, 0)),
        pl.BlockSpec((kcin, tco), lambda b, i, j: (0, j)),
        pl.BlockSpec((1, tco), lambda b, i, j: (0, j)),
    ]
    args = [xs, w, bias]

    if shortcut is not None:
        res_mode = "conv"
        xss, ws, bs = shortcut
        kcs = xss.shape[-1]
        in_specs += [
            pl.BlockSpec((1, thw, kcs), lambda b, i, j: (b, i, 0)),
            pl.BlockSpec((kcs, tco), lambda b, i, j: (0, j)),
            pl.BlockSpec((1, tco), lambda b, i, j: (0, j)),
        ]
        args += [xss, ws, bs]
    elif residual is not None:
        res_mode = "identity"
        in_specs.append(pl.BlockSpec((1, thw, tco), lambda b, i, j: (b, i, j)))
        args.append(residual)
    else:
        res_mode = "none"

    kernel = functools.partial(_block_kernel, relu=relu, res_mode=res_mode)
    return pl.pallas_call(
        kernel,
        out_shape=jax.ShapeDtypeStruct((n, hw, cout), out_dtype),
        grid=grid,
        in_specs=in_specs,
        out_specs=pl.BlockSpec((1, thw, tco), lambda b, i, j: (b, i, j)),
        compiler_params=pltpu.CompilerParams(
            dimension_semantics=("parallel", "parallel", "parallel")),
    )(*args)


# ---------------------------------------------------------------------------
# BasicBlock forward (NCHW in / NCHW out)
# ---------------------------------------------------------------------------
def basic_block_forward(x_nchw, p, stride):
    x = jnp.transpose(x_nchw, (0, 2, 3, 1)).astype(jnp.bfloat16)   # NHWC, bf16
    n, h, w, cin = x.shape
    planes = p["w1"].shape[0]

    s1, b1 = _bn_fold(*p["bn1"])
    s2, b2 = _bn_fold(*p["bn2"])
    w1 = _fold_weight(p["w1"], s1)
    w2 = _fold_weight(p["w2"], s2)
    b1 = b1.reshape(1, planes).astype(jnp.float32)
    b2 = b2.reshape(1, planes).astype(jnp.float32)

    # conv3x3(stride) + BN + ReLU  (bf16 intermediate)
    xs1, ho, wo = _im2col(x, 3, 3, stride, 1)
    y1 = conv_block_pallas(xs1, w1, b1, relu=True, out_dtype=jnp.bfloat16)

    # conv3x3(1) + BN, + shortcut, + ReLU   (shortcut fused into this kernel)
    xs2, _, _ = _im2col(y1.reshape(n, ho, wo, planes), 3, 3, 1, 1)

    if stride != 1 or cin != planes:
        ss, bs = _bn_fold(*p["bns"])
        ws = _fold_weight(p["ws"], ss)                    # (Cin, planes)
        bs = bs.reshape(1, planes).astype(jnp.float32)
        xss, _, _ = _im2col(x, 1, 1, stride, 0)           # (N, Ho*Wo, Cin)
        out = conv_block_pallas(xs2, w2, b2, relu=True,
                                shortcut=(xss, ws, bs), out_dtype=jnp.float32)
    else:
        res = x.reshape(n, h * w, cin)                    # identity (bf16)
        out = conv_block_pallas(xs2, w2, b2, relu=True,
                                residual=res, out_dtype=jnp.float32)

    out = out.reshape(n, ho, wo, planes)
    return jnp.transpose(out, (0, 3, 1, 2))               # back to NCHW, f32


# ---------------------------------------------------------------------------
# Pure-JAX reference (eval-mode BN) and self-test
# ---------------------------------------------------------------------------
def ref_forward(x, p, stride, eps=1e-5):
    def conv(z, w, st, pad):
        return jax.lax.conv_general_dilated(
            z, w, (st, st), [(pad, pad), (pad, pad)],
            dimension_numbers=("NCHW", "OIHW", "NCHW"))

    def bn(z, prm):
        gamma, beta, mean, var = prm
        s = gamma / jnp.sqrt(var + eps)
        return z * s[None, :, None, None] + (beta - mean * s)[None, :, None, None]

    inplanes, planes = p["w1"].shape[1], p["w1"].shape[0]
    out = jnp.maximum(bn(conv(x, p["w1"], stride, 1), p["bn1"]), 0.0)
    out = bn(conv(out, p["w2"], 1, 1), p["bn2"])
    if stride != 1 or inplanes != planes:
        sc = bn(conv(x, p["ws"], stride, 0), p["bns"])
    else:
        sc = x
    return jnp.maximum(out + sc, 0.0)


def _make_params(key, inplanes, planes):
    k1, k2, k3 = jax.random.split(key, 3)

    def bn_params(c, off):
        ar = jnp.arange(c, dtype=jnp.float32)
        return (1.0 + 0.1 * ar,          # gamma
                0.01 * ar + off,         # beta
                0.05 * ar - off,         # running_mean
                1.0 + 0.02 * ar)         # running_var

    return {
        "w1": 0.1 * jax.random.normal(k1, (planes, inplanes, 3, 3), jnp.float32),
        "w2": 0.1 * jax.random.normal(k2, (planes, planes, 3, 3), jnp.float32),
        "ws": 0.1 * jax.random.normal(k3, (planes, inplanes, 1, 1), jnp.float32),
        "bn1": bn_params(planes, 0.02),
        "bn2": bn_params(planes, -0.03),
        "bns": bn_params(planes, 0.01),
    }


if __name__ == "__main__":
    N, H, W = 2, 16, 16
    key = jax.random.PRNGKey(0)

    # (inplanes, planes, stride): downsample (fused 1x1 shortcut) and identity.
    for cfg_key, (inplanes, planes, stride) in zip(
            jax.random.split(key, 2), [(4, 8, 2), (8, 8, 1)]):
        kx, kp = jax.random.split(cfg_key)
        x = jax.random.normal(kx, (N, inplanes, H, W), jnp.float32)
        params = _make_params(kp, inplanes, planes)

        out = jax.block_until_ready(basic_block_forward(x, params, stride))
        ref = jax.block_until_ready(ref_forward(x, params, stride))

        assert out.shape == ref.shape == (N, planes, H // stride, W // stride)
        max_err = float(jnp.max(jnp.abs(out - ref)))
        # bf16 MXU operands => loosened tolerance vs the f32 reference.
        assert max_err < 1e-1, f"mismatch vs reference: {max_err}"

    print("KERNEL_OK")
</pallas_src>

<mosaic_0001>
module attributes {stable_mosaic.version = 11 : i64} {
  func.func @_block_kernel(%arg0: i32, %arg1: i32, %arg2: i32, %arg3: memref<1x64x36xbf16, #tpu.memory_space<vmem>>, %arg4: memref<36x8xbf16, #tpu.memory_space<vmem>>, %arg5: memref<1x8xf32, #tpu.memory_space<vmem>>, %arg6: memref<1x64x8xbf16, #tpu.memory_space<vmem>>) attributes {dimension_semantics = [#tpu.dimension_semantics<parallel>, #tpu.dimension_semantics<parallel>, #tpu.dimension_semantics<parallel>], iteration_bounds = array<i64: 2, 1, 1>, scalar_prefetch = 0 : i64, scratch_operands = 0 : i64, tpu.core_type = #tpu.core_type<tc>, window_params = [{transform_indices = @transform_0, window_bounds = array<i64: 1, 64, 36>}, {transform_indices = @transform_1, window_bounds = array<i64: 36, 8>}, {transform_indices = @transform_2, window_bounds = array<i64: 1, 8>}, {transform_indices = @transform_3, window_bounds = array<i64: 1, 64, 8>}]} {
    %c0 = arith.constant 0 : index
    %c0_0 = arith.constant 0 : index
    %c0_1 = arith.constant 0 : index
    %0 = vector.load %arg3[%c0, %c0_0, %c0_1] : memref<1x64x36xbf16, #tpu.memory_space<vmem>>, vector<1x64x36xbf16>
    %1 = vector.shape_cast %0 : vector<1x64x36xbf16> to vector<64x36xbf16>
    %c0_2 = arith.constant 0 : index
    %c0_3 = arith.constant 0 : index
    %2 = vector.load %arg4[%c0_2, %c0_3] : memref<36x8xbf16, #tpu.memory_space<vmem>>, vector<36x8xbf16>
    %cst = arith.constant dense<0.000000e+00> : vector<64x8xf32>
    %3 = tpu.matmul %1, %2, %cst {dimension_numbers = #tpu.dot_dimension_numbers<[1], [0], [0], [1], [0, 0, 1, 1], [], []>} : vector<64x36xbf16>, vector<36x8xbf16>, vector<64x8xf32> -> vector<64x8xf32>
    %c0_4 = arith.constant 0 : index
    %c0_5 = arith.constant 0 : index
    %4 = vector.load %arg5[%c0_4, %c0_5] : memref<1x8xf32, #tpu.memory_space<vmem>>, vector<1x8xf32>
    %5 = vector.broadcast %4 : vector<1x8xf32> to vector<64x8xf32>
    %6 = arith.addf %3, %5 : vector<64x8xf32>
    %cst_6 = arith.constant 0.000000e+00 : f32
    %7 = vector.broadcast %cst_6 : f32 to vector<64x8xf32>
    %8 = arith.maximumf %6, %7 : vector<64x8xf32>
    %9 = arith.truncf %8 : vector<64x8xf32> to vector<64x8xbf16>
    %c0_7 = arith.constant 0 : index
    %c0_8 = arith.constant 0 : index
    %c0_9 = arith.constant 0 : index
    %10 = vector.load %arg6[%c0_7, %c0_8, %c0_9] : memref<1x64x8xbf16, #tpu.memory_space<vmem>>, vector<1x64x8xbf16>
    %11 = vector.shape_cast %10 : vector<1x64x8xbf16> to vector<64x8xbf16>
    %12 = vector.shape_cast %9 : vector<64x8xbf16> to vector<1x64x8xbf16>
    tpu.vector_store %arg6[%c0_7, %c0_8, %c0_9], %12 {strides = array<i32>} : memref<1x64x8xbf16, #tpu.memory_space<vmem>>, vector<1x64x8xbf16>,
    return
  }
  func.func @transform_0(%arg0: i32, %arg1: i32, %arg2: i32) -> (i32, i32, i32) {
    %c0_i32 = arith.constant 0 : i32
    %c0_i32_0 = arith.constant 0 : i32
    return %arg0, %arg1, %c0_i32 : i32, i32, i32
  }
  func.func @transform_1(%arg0: i32, %arg1: i32, %arg2: i32) -> (i32, i32) {
    %c0_i32 = arith.constant 0 : i32
    %c0_i32_0 = arith.constant 0 : i32
    return %c0_i32, %arg2 : i32, i32
  }
  func.func @transform_2(%arg0: i32, %arg1: i32, %arg2: i32) -> (i32, i32) {
    %c0_i32 = arith.constant 0 : i32
    %c0_i32_0 = arith.constant 0 : i32
    return %c0_i32, %arg2 : i32, i32
  }
  func.func @transform_3(%arg0: i32, %arg1: i32, %arg2: i32) -> (i32, i32, i32) {
    %c0_i32 = arith.constant 0 : i32
    return %arg0, %arg1, %arg2 : i32, i32, i32
  }
}

</mosaic_0001>

<bundles_post_ra>
// kernel: tpu_custom_call.1
= control target key start
LH: loop header
LB: loop body
LE: loop exit
PB: predicated region body
PF: predicated region fallthrough
CT: control target
= control target key end

     0   :  { %s717_s12 = smov 0   ;;  %s719_s13 = smov 0   ;;  %s783_s0 = inlined_call_operand.vmem [shape: bf16[2,64,36], index: 0, kind: input, shape index: {}]   ;;  %s784_s1 = inlined_call_operand.vmem [shape: bf16[36,8], index: 1, kind: input, shape index: {}]   ;;  %s785_s2 = inlined_call_operand.vmem [shape: f32[1,8], index: 2, kind: input, shape index: {}]   ;;  %s786_s3 = inlined_call_operand.vmem [shape: bf16[2,64,8], index: 3, kind: output, shape index: {}]  }
   0x1   :  { %s721_s14 = smov 0  }
   0x2 LB: > { %s32_s15 = sadd.s32 1, %s691_s13  ;;  %p576_p0 = scmp.ge.s32.totalorder %s695_s14, 1  ;;  %s695_s14 = sphi %s721_s14, %s13_s14   ;;  %s691_s13 = sphi %s719_s13, %s788_s13   ;;  %s687_s12 = sphi %s717_s12, %s787_s12  }
   0x3   : > { %p34_p1 = scmp.ge.s32.totalorder %s32_s15, 2  ;;  %p184_p2 = scmp.lt.s32.totalorder %s695_s14, 3 }
   0x5   : > { %s790_s15 = smov (%p34_p1, %s32_s15), 0  ;;  %p185_p3 = pnand %p576_p0, %p184_p2 }
   0x6   : > { %p227_p4 = scmp.lt.s32.totalorder (!%p185_p3), %s687_s12, 1 }
   0x7   : > { %188 = sbr.rel (%p185_p3) target bundleno = 232 (0xe8), region = 32 }
   0xc   : > { %v666_v0 = vld [vmem:[%s784_s1 + $0x10] ss:$0 sps:$4 sm:$0x33]   ;;  %vm325_vm0 = vcmask 1041408   ;;  %v667_v1 = vld [vmem:[%s784_s1 + $0x8] sm:$0xff]   ;;  %s792_s12 = smov (!%p227_p4, %s687_s12), 1 }
   0xd   : > { %640 = vmatprep.subr.msk.bf16.mxu0 %vm325_vm0, %v666_v0  ;;  %641 = vmatprep.subr.msk.bf16.mxu1 %vm325_vm0, %v666_v0  ;;  %v327_v2 = vsel %vm325_vm0, %v666_v0, 0  ;;  %v668_v3 = vld [vmem:[%s784_s1] sm:$0xff]   ;;  %s603_s22 = sshll.u32 %s792_s12, 5  ;;  %vm312_vm1 = vcmask 293888   ;;  %vm434_vm2 = vcmask 60416  }
   0xe   : > { %621 = vmatpush3.bf16.msra.mxu0 %v327_v2  ;;  %637 = vmatpush3.bf16.msra.mxu1 %v327_v2  ;;  %s234_s25 = scalar_lea.vmem %s783_s0, %s603_s22  ;;  %v581_v8 = vld [vmem:[%s785_s2] ss:$0 sm:$0xff]  ;;  %s756_s30 = scalar_lea.vmem %s786_s3, %s603_s22 }
   0xf   : > { %622 = vmatprep.subr.bf16.mxu0 %v667_v1  ;;  %635 = vmatprep.subr.bf16.mxu1 %v667_v1  ;;  %v669_v4 = vld [vmem:[%s234_s25] sm:$0xff]   ;;  %v670_v5 = vld [vmem:[%s234_s25 + $0x10] sm:$0xff]   ;;  %v671_v6 = vld [vmem:[%s234_s25 + $0x8] sm:$0xff]  }
  0x10   : > { %626 = vmatprep.mubr.msk.bf16.mxu0 %vm312_vm1, %v669_v4  ;;  %630 = vmatprep.mubr.msk.bf16.mxu1 %vm312_vm1, %v670_v5  ;;  %v672_v7 = vld [vmem:[%s234_s25 + $0x18] sm:$0xff]  }
  0x12   : > { %623 = vmatpush3.bf16.msra.mxu0 %v667_v1  ;;  %638 = vmatpush3.bf16.msra.mxu1 %v667_v1 }
  0x13   : > { %624 = vmatprep.subr.bf16.mxu0 %v668_v3  ;;  %636 = vmatprep.subr.bf16.mxu1 %v668_v3 }
  0x16   : > { %625 = vmatpush3.bf16.msra.mxu0 %v668_v3  ;;  %639 = vmatpush3.bf16.msra.mxu1 %v668_v3 }
  0x19   : > { %627 = vmatmul.mubr.msk.bf16.vlgmr.msra.gmra.mxu0 %vm312_vm1, %v671_v6  ;;  %631 = vmatmul.mubr.msk.bf16.vlgmr.msra.gmra.mxu1 %vm312_vm1, %v672_v7 }
  0xd9   : > { %v628_v9 = vpop.f32.mrf.mxu0  ;;  %v632_v10 = vpop.f32.mrf.mxu1 }
  0xda   : > { %v372_v11 = vadd.f32 %v628_v9, %v581_v8  ;;  %v388_v12 = vadd.f32 %v632_v10, %v581_v8 }
  0xdb   : > { %v363_v13 = vpop.f32.mrf.mxu0  ;;  %v379_v14 = vpop.f32.mrf.mxu1 }
  0xdc   : > { %v396_v15 = vmax.f32 %v372_v11, 0.0  ;;  %v400_v16 = vmax.f32 %v388_v12, 0.0  ;;  %v364_v17 = vadd.f32 %v581_v8, %v363_v13  ;;  %v380_v18 = vadd.f32 %v581_v8, %v379_v14 }
  0xdd   : > { %v629_v19 = vpop.f32.mrf.mxu0  ;;  %v633_v20 = vpop.f32.mrf.mxu1 }
  0xde   : > { %v607_v21 = vpack.c.bf16 %v396_v15, %v396_v15  ;;  %v611_v22 = vpack.c.bf16 %v400_v16, %v400_v16  ;;  %v394_v23 = vmax.f32 %v364_v17, 0.0  ;;  %v398_v24 = vmax.f32 %v380_v18, 0.0 }
  0xdf   : > { %v375_v25 = vadd.f32 %v629_v19, %v581_v8  ;;  %v391_v26 = vadd.f32 %v633_v20, %v581_v8  ;;  %v366_v27 = vpop.f32.mrf.mxu0  ;;  %v382_v28 = vpop.f32.mrf.mxu1 }
  0xe0   : > { %437 = vst.msk [vmem:[%s756_s30 + $0x8] sm:$0xf] %vm434_vm2, %v607_v21  ;;  %441 = vst.msk [vmem:[%s756_s30 + $0x18] sm:$0xf] %vm434_vm2, %v611_v22  ;;  %v605_v29 = vpack.c.bf16 %v394_v23, %v394_v23  ;;  %v609_v30 = vpack.c.bf16 %v398_v24, %v398_v24  ;;  %v367_v31 = vadd.f32 %v581_v8, %v366_v27 }
  0xe1   : > { %v383_v32 = vadd.f32 %v581_v8, %v382_v28  ;;  %v397_v33 = vmax.f32 %v375_v25, 0.0  ;;  %v401_v34 = vmax.f32 %v391_v26, 0.0 }
  0xe2   : > { %435 = vst.msk [vmem:[%s756_s30] sm:$0xf] %vm434_vm2, %v605_v29  ;;  %439 = vst.msk [vmem:[%s756_s30 + $0x10] sm:$0xf] %vm434_vm2, %v609_v30  ;;  %v395_v35 = vmax.f32 %v367_v31, 0.0 }
  0xe3   : > { %v399_v36 = vmax.f32 %v383_v32, 0.0  ;;  %v608_v37 = vpack.c.bf16 %v397_v33, %v397_v33  ;;  %v612_v38 = vpack.c.bf16 %v401_v34, %v401_v34 }
  0xe4   : > { %v606_v39 = vpack.c.bf16 %v395_v35, %v395_v35 }
  0xe5   : > { %v610_v40 = vpack.c.bf16 %v399_v36, %v399_v36  ;;  %438 = vst.msk [vmem:[%s756_s30 + $0xc] sm:$0xf] %vm434_vm2, %v608_v37  ;;  %442 = vst.msk [vmem:[%s756_s30 + $0x1c] sm:$0xf] %vm434_vm2, %v612_v38 }
  0xe6   : > { %436 = vst.msk [vmem:[%s756_s30 + $0x4] sm:$0xf] %vm434_vm2, %v606_v39 }
  0xe7   : > { %440 = vst.msk [vmem:[%s756_s30 + $0x14] sm:$0xf] %vm434_vm2, %v610_v40 }
  0xe8 PF: > { %s13_s14 = sadd.s32 1, %s695_s14   ;;  %s787_s12 = smov %s691_s13 }
  0xe9   : > { %p10_p5 = scmp.ge.s32.totalorder %s13_s14, 4   ;;  %s788_s13 = smov %s790_s15 }
  0xeb   :  { %12 = sbr.rel (!%p10_p5) target bundleno = 2 (0x2), region = 68 }

</bundles_post_ra>
